<compile_context>
chip_gen: v7x
topology: tpu7x:2x2x1
jax: 0.10.0
libtpu: 0.0.40
codegen_flags: <defaults>
</compile_context>

<pallas_src>
import functools

import jax
import jax.numpy as jnp
from jax.experimental import pallas as pl
from jax.experimental.pallas import tpu as pltpu

EPS = 1e-5
LANE = 128


def _round_up(x, m):
    return ((x + m - 1) // m) * m


# ----------------------------------------------------------------------------- kernels
def linear_kernel(x_ref, w_ref, o_ref):
    # z = x @ W  (bias omitted: cancelled by the BatchNorm that follows)
    o_ref[...] = jnp.dot(x_ref[...].astype(jnp.bfloat16), w_ref[...],
                         preferred_element_type=jnp.float32)


def bn_relu_drop_linear_kernel(z_ref, s_ref, t_ref, bits_ref, w_ref, o_ref,
                               *, threshold, inv_keep):
    # fused BN(prev layer) -> ReLU -> Dropout -> next Linear
    h = jnp.maximum(z_ref[...] * s_ref[...] + t_ref[...], 0.0)
    keep = bits_ref[...] >= jnp.uint32(threshold)          # P(drop) = p, pure int compare
    h = jnp.where(keep, h * inv_keep, 0.0)                 # inverted dropout
    o_ref[...] = jnp.dot(h.astype(jnp.bfloat16), w_ref[...],
                         preferred_element_type=jnp.float32)


def bn_relu_linear_kernel(z_ref, s_ref, t_ref, w_ref, o_ref):
    # fused BN(prev layer) -> ReLU -> next Linear (no dropout)
    h = jnp.maximum(z_ref[...] * s_ref[...] + t_ref[...], 0.0)
    o_ref[...] = jnp.dot(h.astype(jnp.bfloat16), w_ref[...],
                         preferred_element_type=jnp.float32)


def bn_relu_linear_bias_kernel(z_ref, s_ref, t_ref, w_ref, b_ref, o_ref):
    # fused BN3 -> ReLU -> fc4 (+ bias): produces the scores
    h = jnp.maximum(z_ref[...] * s_ref[...] + t_ref[...], 0.0)
    o_ref[...] = (jnp.dot(h.astype(jnp.bfloat16), w_ref[...],
                          preferred_element_type=jnp.float32) + b_ref[...])


# ----------------------------------------------------------------------------- launch helper
def _launch(kernel, inputs, out_cols, *, n_pad, tile_n, flops):
    """inputs: list of (array, is_row_tiled) in kernel argument order."""
    grid = (n_pad // tile_n,)
    in_specs, args = [], []
    bytes_accessed = n_pad * out_cols * 4
    vmem = 2 * tile_n * out_cols * 4                        # double-buffered output tile
    for arr, tiled in inputs:
        args.append(arr)
        nbytes = arr.size * arr.dtype.itemsize
        bytes_accessed += nbytes
        if tiled:
            in_specs.append(pl.BlockSpec((tile_n, arr.shape[1]), lambda i: (i, 0)))
            vmem += 2 * tile_n * arr.shape[1] * arr.dtype.itemsize
        else:
            # weights / per-feature vectors: constant index_map -> VMEM resident
            in_specs.append(pl.BlockSpec(arr.shape, lambda i: (0, 0)))
            vmem += 2 * nbytes
    vmem_limit = int(min(64 * 2**20, max(2 * vmem, 16 * 2**20)))  # safe on v5e/v6e/v7x

    return pl.pallas_call(
        kernel,
        grid=grid,
        in_specs=in_specs,
        out_specs=pl.BlockSpec((tile_n, out_cols), lambda i: (i, 0)),
        out_shape=jax.ShapeDtypeStruct((n_pad, out_cols), jnp.float32),
        compiler_params=pltpu.CompilerParams(
            dimension_semantics=("parallel",),              # batch tiles shard across TCs (v7x)
            vmem_limit_bytes=vmem_limit),
        cost_estimate=pl.CostEstimate(flops=flops, transcendentals=0,
                                      bytes_accessed=bytes_accessed),
    )(*args)


# ----------------------------------------------------------------------------- params
def init_fcnet_params(key, inpt_dim, h1_dim=150, h2_dim=100, h3_dim=50, n_out=3):
    """PyTorch-default-style init, stored lane-padded (multiples of 128) and transposed
    to (in_features, out_features) so the kernels compute x @ W.  Weights are bf16
    (MXU operands); padded rows/cols are zero; padded BN gamma is zero."""
    dims = (inpt_dim, h1_dim, h2_dim, h3_dim, n_out)
    pads = tuple(_round_up(d, LANE) for d in dims)
    params = {"dims": dims}
    for i in range(4):
        fan_in, fan_out = dims[i], dims[i + 1]
        in_pad, out_pad = pads[i], pads[i + 1]
        key, kw, kb = jax.random.split(key, 3)
        bound = 1.0 / (fan_in ** 0.5)
        w = jax.random.uniform(kw, (fan_in, fan_out), jnp.float32, -bound, bound)
        w = jnp.pad(w, ((0, in_pad - fan_in), (0, out_pad - fan_out)))
        params[f"w{i + 1}"] = w.astype(jnp.bfloat16)
        if i == 3:  # only fc4 keeps a bias; b1..b3 are exactly cancelled by BatchNorm
            b = jax.random.uniform(kb, (1, fan_out), jnp.float32, -bound, bound)
            params[f"b{i + 1}"] = jnp.pad(b, ((0, 0), (0, out_pad - fan_out)))
    for i, (h, hp) in enumerate(zip(dims[1:4], pads[1:4]), start=1):
        params[f"g{i}"] = jnp.zeros((1, hp), jnp.float32).at[:, :h].set(1.0)  # BN gamma
        params[f"be{i}"] = jnp.zeros((1, hp), jnp.float32)                    # BN beta
    return params


def _bn_scale_shift(z_real, gamma, beta):
    """Training-mode BatchNorm1d folded into one scale/shift (biased variance, eps=1e-5).
    Computed over the *real* batch rows only (cheap per-feature reduction, plain XLA)."""
    mean = jnp.mean(z_real, axis=0, keepdims=True)
    var = jnp.mean(jnp.square(z_real - mean), axis=0, keepdims=True)
    scale = gamma * jax.lax.rsqrt(var + EPS)
    shift = beta - scale * mean
    return scale, shift


# ----------------------------------------------------------------------------- forward
def fcnet_forward(layer0, layer1, layer2, params, *, dropout_key,
                  p=0.5, training=True, tile_n=512):
    N = layer0.shape[0]
    x = jnp.concatenate([layer0.reshape(N, -1), layer1.reshape(N, -1),
                         layer2.reshape(N, -1)], axis=1).astype(jnp.float32)
    d_in_pad = params["w1"].shape[0]
    n_out = params["dims"][-1]

    # pad the batch to a tile multiple (padded rows are zero and never touch BN stats)
    n8 = _round_up(N, 8)
    tile_n = min(tile_n, n8)
    n_pad = _round_up(n8, tile_n)
    x = jnp.pad(x, ((0, n_pad - N), (0, d_in_pad - x.shape[1])))

    use_dropout = training and p > 0.0
    if use_dropout:
        assert 0.0 < p < 1.0
        kb1, kb2 = jax.random.split(dropout_key)
        threshold = min(int(round(p * (2 ** 32))), 2 ** 32 - 1)
        inv_keep = float(1.0 / (1.0 - p))

    def mm_flops(w):
        return 2 * n_pad * w.shape[0] * w.shape[1]

    # --- fc1 ------------------------------------------------------------------
    w1 = params["w1"]
    z1 = _launch(linear_kernel, [(x, True), (w1, False)], w1.shape[1],
                 n_pad=n_pad, tile_n=tile_n, flops=mm_flops(w1))
    s1, t1 = _bn_scale_shift(z1[:N], params["g1"], params["be1"])

    # --- bn1 + relu + dropout + fc2 -------------------------------------------
    w2 = params["w2"]
    if use_dropout:
        bits1 = jax.random.bits(kb1, (n_pad, z1.shape[1]), dtype=jnp.uint32)
        k2 = functools.partial(bn_relu_drop_linear_kernel,
                               threshold=threshold, inv_keep=inv_keep)
        ins2 = [(z1, True), (s1, False), (t1, False), (bits1, True), (w2, False)]
    else:
        k2 = bn_relu_linear_kernel
        ins2 = [(z1, True), (s1, False), (t1, False), (w2, False)]
    z2 = _launch(k2, ins2, w2.shape[1], n_pad=n_pad, tile_n=tile_n, flops=mm_flops(w2))
    s2, t2 = _bn_scale_shift(z2[:N], params["g2"], params["be2"])

    # --- bn2 + relu + dropout + fc3 -------------------------------------------
    w3 = params["w3"]
    if use_dropout:
        bits2 = jax.random.bits(kb2, (n_pad, z2.shape[1]), dtype=jnp.uint32)
        k3 = functools.partial(bn_relu_drop_linear_kernel,
                               threshold=threshold, inv_keep=inv_keep)
        ins3 = [(z2, True), (s2, False), (t2, False), (bits2, True), (w3, False)]
    else:
        k3 = bn_relu_linear_kernel
        ins3 = [(z2, True), (s2, False), (t2, False), (w3, False)]
    z3 = _launch(k3, ins3, w3.shape[1], n_pad=n_pad, tile_n=tile_n, flops=mm_flops(w3))
    s3, t3 = _bn_scale_shift(z3[:N], params["g3"], params["be3"])

    # --- bn3 + relu + fc4 (+bias) ----------------------------------------------
    w4, b4 = params["w4"], params["b4"]
    scores = _launch(bn_relu_linear_bias_kernel,
                     [(z3, True), (s3, False), (t3, False), (w4, False), (b4, False)],
                     w4.shape[1], n_pad=n_pad, tile_n=tile_n, flops=mm_flops(w4))

    return scores[:N, :n_out]


# ----------------------------------------------------------------------------- demo
if __name__ == "__main__":
    key = jax.random.PRNGKey(0)
    k0, k1, k2, kp, kd = jax.random.split(key, 5)

    # small shapes consistent with the module's forward:
    # layer0: (N,4,4,4)->64, layer1: (N,2,4,4)->32, layer2: (N,32)->32  => inptDim=128
    N = 8
    layer0 = jax.random.normal(k0, (N, 4, 4, 4), jnp.float32)
    layer1 = jax.random.normal(k1, (N, 2, 4, 4), jnp.float32)
    layer2 = jax.random.normal(k2, (N, 32), jnp.float32)

    inpt_dim = 4 * 4 * 4 + 2 * 4 * 4 + 32  # 128
    params = init_fcnet_params(kp, inpt_dim, h1_dim=64, h2_dim=48, h3_dim=32, n_out=3)

    scores = fcnet_forward(layer0, layer1, layer2, params,
                           dropout_key=kd, p=0.5, training=True)
    scores = jax.block_until_ready(scores)
    assert scores.shape == (N, 3) and scores.dtype == jnp.float32
    assert bool(jnp.all(jnp.isfinite(scores)))
    print("KERNEL_OK")
</pallas_src>

<mosaic_0001>
module attributes {stable_mosaic.version = 11 : i64} {
  func.func @linear_kernel(%arg0: i32, %arg1: memref<8x128xf32, #tpu.memory_space<vmem>>, %arg2: memref<128x128xbf16, #tpu.memory_space<vmem>>, %arg3: memref<8x128xf32, #tpu.memory_space<vmem>>) attributes {dimension_semantics = [#tpu.dimension_semantics<parallel>], iteration_bounds = array<i64: 1>, scalar_prefetch = 0 : i64, scratch_operands = 0 : i64, tpu.core_type = #tpu.core_type<tc>, window_params = [{transform_indices = @transform_0, window_bounds = array<i64: 8, 128>}, {pipeline_mode = #tpu.pipeline_mode<synchronous>, transform_indices = @transform_1, window_bounds = array<i64: 128, 128>}, {transform_indices = @transform_2, window_bounds = array<i64: 8, 128>}]} {
    %c0 = arith.constant 0 : index
    %c0_0 = arith.constant 0 : index
    %0 = vector.load %arg1[%c0, %c0_0] : memref<8x128xf32, #tpu.memory_space<vmem>>, vector<8x128xf32>
    %1 = arith.truncf %0 : vector<8x128xf32> to vector<8x128xbf16>
    %c0_1 = arith.constant 0 : index
    %c0_2 = arith.constant 0 : index
    %2 = vector.load %arg2[%c0_1, %c0_2] : memref<128x128xbf16, #tpu.memory_space<vmem>>, vector<128x128xbf16>
    %cst = arith.constant dense<0.000000e+00> : vector<8x128xf32>
    %3 = tpu.matmul %1, %2, %cst {dimension_numbers = #tpu.dot_dimension_numbers<[1], [0], [0], [1], [0, 0, 1, 1], [], []>} : vector<8x128xbf16>, vector<128x128xbf16>, vector<8x128xf32> -> vector<8x128xf32>
    %c0_3 = arith.constant 0 : index
    %c0_4 = arith.constant 0 : index
    %4 = vector.load %arg3[%c0_3, %c0_4] : memref<8x128xf32, #tpu.memory_space<vmem>>, vector<8x128xf32>
    tpu.vector_store %arg3[%c0_3, %c0_4], %3 {strides = array<i32>} : memref<8x128xf32, #tpu.memory_space<vmem>>, vector<8x128xf32>,
    return
  }
  func.func @transform_0(%arg0: i32) -> (i32, i32) {
    %c0_i32 = arith.constant 0 : i32
    %c0_i32_0 = arith.constant 0 : i32
    return %arg0, %c0_i32 : i32, i32
  }
  func.func @transform_1(%arg0: i32) -> (i32, i32) {
    %c0_i32 = arith.constant 0 : i32
    %c0_i32_0 = arith.constant 0 : i32
    %c0_i32_1 = arith.constant 0 : i32
    return %c0_i32, %c0_i32_0 : i32, i32
  }
  func.func @transform_2(%arg0: i32) -> (i32, i32) {
    %c0_i32 = arith.constant 0 : i32
    %c0_i32_0 = arith.constant 0 : i32
    return %arg0, %c0_i32 : i32, i32
  }
}

</mosaic_0001>

<bundles_post_ra>
// kernel: tpu_custom_call.1
= control target key start
LH: loop header
LB: loop body
LE: loop exit
PB: predicated region body
PF: predicated region fallthrough
CT: control target
= control target key end

     0   :  { %7 = vsyncpa [#allocation3], 0  ;;  %s351_s0 = inlined_call_operand.hbm [shape: f32[8,128], index: 0, kind: input, shape index: {}]   ;;  %s352_s1 = inlined_call_operand.hbm [shape: bf16[128,128], index: 1, kind: input, shape index: {}]   ;;  %s353_s2 = inlined_call_operand.hbm [shape: f32[8,128], index: 2, kind: output, shape index: {}]  }
   0x1   :  { %8 = vsyncpa [#allocation6], 0 }
   0x2   :  { %9 = vsyncpa [#allocation4], 0  ;;  %s286_s9 = smov [#allocation2]   ;;  %s287_s11 = smov [#allocation5]  }
   0x3   :  { %s16_s10 = sshll.u32 %s286_s9, 4  ;;  %s25_s12 = sshll.u32 %s287_s11, 4  ;;  %s17_s10 = int_to_ptr.vmem [resolvable:$true] %s16_s10  ;;  %s308_s12 = int_to_ptr.vmem [resolvable:$true] %s25_s12 }
   0x4   :  { %s214_s15 = scalar_lea.hbm %s351_s0, 128 }
   0x5   :  { %p215_p0 = scmp.ne.s32.totalorder %s351_s0, %s214_s15  ;;  %p218_p1 = scmp.lt.u32.totalorder %s214_s15, %s351_s0 }
   0x7   :  { %p220_p2 = pnand %p218_p1, %p215_p0 }
   0x9   :  { %223 = shalt.err (!%p220_p2)
}
   0xa   :  { %s224_s20 = scalar_lea.vmem %s17_s10, 128  ;;  %p229_p4 = scmp.lt.s32.totalorder %s17_s10, %s17_s10 }
   0xb   :  { %p225_p3 = scmp.ne.s32.totalorder %s17_s10, %s224_s20  ;;  %p230_p5 = scmp.lt.s32.totalorder %s224_s20, %s224_s20 }
   0xd   :  { %p231_p6 = por %p230_p5, %p229_p4 }
   0xf   :  { %p232_p7 = pnand %p231_p6, %p225_p3 }
  0x11   :  { %235 = shalt.err (!%p232_p7)
}
  0x12   :  { %19 = dma.hbm_to_vmem [thread:$0]  %s351_s0, 128, %s17_s10, [#allocation3]  }
  0x13   :  { %s236_s25 = scalar_lea.hbm %s352_s1, 1024 }
  0x14   :  { %p237_p8 = scmp.ne.s32.totalorder %s352_s1, %s236_s25  ;;  %p240_p9 = scmp.lt.u32.totalorder %s236_s25, %s352_s1 }
  0x16   :  { %p242_p10 = pnand %p240_p9, %p237_p8 }
  0x18   :  { %245 = shalt.err (!%p242_p10)
}
  0x19   :  { %s246_s30 = scalar_lea.vmem %s308_s12, 1024  ;;  %p251_p12 = scmp.lt.s32.totalorder %s308_s12, %s308_s12 }
  0x1a   :  { %p247_p11 = scmp.ne.s32.totalorder %s308_s12, %s246_s30  ;;  %p252_p13 = scmp.lt.s32.totalorder %s246_s30, %s246_s30 }
  0x1c   :  { %p253_p0 = por %p252_p13, %p251_p12 }
  0x1e   :  { %p254_p1 = pnand %p253_p0, %p247_p11 }
  0x20   :  { %257 = shalt.err (!%p254_p1)
}
  0x21   :  { %s288_s0 = smov 64   ;;  %s289_s3 = smov 4  }
  0x22   :  { %31 = dma.hbm_to_vmem [thread:$0]  %s352_s1, 1024, %s308_s12, [#allocation6], %s288_s0, %s288_s0, %s289_s3  }
  0x23   :  { %280 = dma.done.wait [#allocation3], 128  }
  0x24   :  { %281 = vsyncadd [#allocation3], 4294967168 }
  0x25   :  { %282 = dma.done.wait [#allocation6], 1024  }
  0x26   :  { %283 = vsyncadd [#allocation6], 4294966272  ;;  %v290_v0 = vmov 0.0   ;;  %vm291_vm0 = vmmov 0   ;;  %v206_v1 = vld [vmem:[#allocation5] sm:$0xff]   ;;  %v207_v2 = vld [vmem:[#allocation5 + $0x8] sm:$0xff]  }
  0x27   :  { %179 = vmatprep.subr.bf16.mxu0 %v290_v0  ;;  %195 = vmatprep.mubr.msk.bf16.mxu0 %vm291_vm0, %v290_v0  ;;  %v208_v3 = vld [vmem:[#allocation5 + $0x10] sm:$0xff]   ;;  %v209_v4 = vld [vmem:[#allocation5 + $0x18] sm:$0xff]   ;;  %v210_v5 = vld [vmem:[#allocation5 + $0x20] sm:$0xff]   ;;  %s292_s1 = smov [#allocation7]  }
  0x28   :  { %180 = vmatpush3.bf16.msra.mxu0 %v206_v1  ;;  %v211_v6 = vld [vmem:[#allocation5 + $0x28] sm:$0xff]   ;;  %v212_v7 = vld [vmem:[#allocation5 + $0x30] sm:$0xff]   ;;  %v213_v8 = vld [vmem:[#allocation5 + $0x38] sm:$0xff]   ;;  %s152_s6 = sshll.u32 %s292_s1, 4  ;;  %s153_s6 = int_to_ptr.vmem [resolvable:$true] %s152_s6 }
  0x29   :  { %181 = vmatprep.subr.bf16.mxu0 %v290_v0  ;;  %v39_v9 = vld [vmem:[#allocation2] sm:$0xff]  ;;  %s258_s7 = scalar_lea.vmem %s153_s6, 128  ;;  %p263_p3 = scmp.lt.s32.totalorder %s153_s6, %s153_s6 }
  0x2a   :  { %v40_v10 = vpack.c.bf16 %v39_v9, %v39_v9  ;;  %p259_p2 = scmp.ne.s32.totalorder %s153_s6, %s258_s7  ;;  %p264_p4 = scmp.lt.s32.totalorder %s258_s7, %s258_s7 }
  0x2c   :  { %182 = vmatpush3.bf16.msra.mxu0 %v207_v2  ;;  %p265_p5 = por %p264_p4, %p263_p3 }
  0x2d   :  { %183 = vmatprep.subr.bf16.mxu0 %v290_v0 }
  0x2e   :  { %p266_p6 = pnand %p265_p5, %p259_p2 }
  0x30   :  { %184 = vmatpush3.bf16.msra.mxu0 %v208_v3 }
  0x31   :  { %185 = vmatprep.subr.bf16.mxu0 %v290_v0 }
  0x34   :  { %186 = vmatpush3.bf16.msra.mxu0 %v209_v4 }
  0x35   :  { %187 = vmatprep.subr.bf16.mxu0 %v290_v0 }
  0x38   :  { %188 = vmatpush3.bf16.msra.mxu0 %v210_v5 }
  0x39   :  { %189 = vmatprep.subr.bf16.mxu0 %v290_v0 }
  0x3c   :  { %190 = vmatpush3.bf16.msra.mxu0 %v211_v6 }
  0x3d   :  { %191 = vmatprep.subr.bf16.mxu0 %v290_v0 }
  0x40   :  { %192 = vmatpush3.bf16.msra.mxu0 %v212_v7 }
  0x41   :  { %193 = vmatprep.subr.bf16.mxu0 %v290_v0 }
  0x44   :  { %194 = vmatpush3.bf16.msra.mxu0 %v213_v8 }
  0x47   :  { %196 = vmatmul.mubr.bf16.vlgmr.msra.gmra.mrb[0].mxu0 %v40_v10 }
 0x11a   :  { %v139_v11 = vpop.f32.mrb[0].mxu0 }
 0x11b   :  { %145 = vst [vmem:[#allocation7] sm:$0xff] %v139_v11  ;;  %v197_v12 = vpop.f32.mrb[1].mxu0 }
 0x11c   :  { %v142_v13 = vpop.f32.mrb[2].mxu0 }
 0x11d   :  { %269 = shalt.err (!%p266_p6)
}
 0x11e   :  { %s270_s10 = scalar_lea.hbm %s353_s2, 128 }
 0x11f   :  { %p271_p7 = scmp.ne.s32.totalorder %s353_s2, %s270_s10  ;;  %p274_p8 = scmp.lt.u32.totalorder %s270_s10, %s353_s2 }
 0x121   :  { %p276_p9 = pnand %p274_p8, %p271_p7 }
 0x123   :  { %279 = shalt.err (!%p276_p9)
}
 0x124   :  { %155 = dma.vmem_to_hbm [thread:$0]  %s153_s6, 128, %s353_s2, [#allocation4]   ;;  %v198_v14 = vpop.f32.mrb[3].mxu0 }
 0x125   :  { %284 = dma.done.wait [#allocation4], 128  }
 0x126   :  { %285 = vsyncadd [#allocation4], 4294967168 }
 0x127   :  { %159 = vsyncpa [#allocation3], 1 }
 0x128   :  { %160 = vsyncpa [#allocation6], 1 }
 0x129   :  { %161 = vsyncpa [#allocation4], 1 }

</bundles_post_ra>
